<compile_context>
chip_gen: v7x
topology: tpu7x:2x2x1
jax: 0.10.0
libtpu: 0.0.40
codegen_flags: <defaults>
</compile_context>

<pallas_src>
import functools

import jax
import jax.numpy as jnp
from jax.experimental import pallas as pl
from jax.experimental.pallas import tpu as pltpu


# ----------------------------------------------------------------------------
# Tiling / VMEM-budget helpers (sized for v7x's 64 MiB VMEM; safe on v5e/v6e)
# ----------------------------------------------------------------------------
_LANE = 128
_SUBLANE_BF16 = 16
_MAX_TK = 7168                            # review: v7x-safe reduction tile
_MAX_TM = 1024                            # grow tm before adding M tiles
_VMEM_BLOCK_BUDGET = 36 * 1024 * 1024     # streamed blocks + acc + out
_VMEM_LIMIT_BYTES = 48 * 1024 * 1024      # <= ~48 MiB (v7x physical is 64)


def _round_up(x, m):
    return ((x + m - 1) // m) * m


def _choose_tm(m):
    """One M tile for small M, otherwise exactly two 'parallel' M tiles so
    both v7x TensorCores stream weights; each extra M tile re-reads the whole
    weight from HBM, so the M-tile count is kept at 1-2 (capped tm)."""
    if m < 32:
        return max(_SUBLANE_BF16, _round_up(m, _SUBLANE_BF16))
    return min(_MAX_TM, _round_up((m + 1) // 2, _SUBLANE_BF16))


def _block_vmem_bytes(tm, tk, np_):
    # 12*tm*np_ : f32 accumulator + double-buffered f32 out block
    # 4*tm*tk   : double-buffered bf16 x block
    # 6*np_*tk  : triple-buffered bf16 w block
    return 12 * tm * np_ + tk * (4 * tm + 6 * np_)


def _choose_tk(tm, np_, k):
    fixed = 12 * tm * np_
    per_tk = 4 * tm + 6 * np_
    tk = (_VMEM_BLOCK_BUDGET - fixed) // per_tk
    tk = (tk // _LANE) * _LANE
    return max(_LANE, min(tk, _MAX_TK, _round_up(k, _LANE)))


# ----------------------------------------------------------------------------
# Hoisted weight preparation (done ONCE, not per forward call)
# ----------------------------------------------------------------------------
def prepare_projection_weight(w, rows_hint=256):
    """Cast a projection weight to bf16 and zero-pad it to the kernel's
    (Kp, Np) tile grid once, at params-prep time.  Doing this per call would
    re-read/write the full weight from HBM on every forward."""
    k, n = w.shape
    np_ = _round_up(n, _LANE)
    tk = _choose_tk(_choose_tm(rows_hint), np_, k)
    kp = _round_up(k, tk)
    wp = jnp.pad(w.astype(jnp.bfloat16), ((0, kp - k), (0, np_ - n)))
    # TODO(synk): int8 (v5e/v6e) or fp8-e4m3 (v7x) weight quantisation would
    # halve the dominant HBM weight stream again (dequant scale folded into
    # the f32 epilogue before the L2 norm).
    return {"wp": wp, "k": k, "n": n, "kp": kp, "np": np_, "tk": tk}


def prepare_clip_params(params, config, batch_size):
    """Hoist the bf16 cast + padding of both projection weights."""
    return {
        "w_text": prepare_projection_weight(params["w_text"],
                                            rows_hint=batch_size),
        "w_img": prepare_projection_weight(
            params["w_img"], rows_hint=batch_size * config["num_frames"]),
    }


# ----------------------------------------------------------------------------
# Kernel 1: tiled linear projection (M parallel, K reduction) + L2 normalise
# ----------------------------------------------------------------------------
def _proj_norm_kernel(x_ref, w_ref, o_ref, acc_ref):
    k = pl.program_id(1)

    @pl.when(k == 0)
    def _():
        acc_ref[...] = jnp.zeros_like(acc_ref)

    # bf16 x bf16 -> f32 accumulate on the MXU
    acc_ref[...] += jnp.dot(
        x_ref[...], w_ref[...], preferred_element_type=jnp.float32
    )

    @pl.when(k == pl.num_programs(1) - 1)
    def _():
        acc = acc_ref[...]
        # features / features.norm(dim=-1, keepdim=True).  Padded N columns
        # are zero so they never perturb the norm; the eps only keeps all-zero
        # padded rows finite (they are sliced away by the caller).
        inv = jax.lax.rsqrt(jnp.sum(acc * acc, axis=-1, keepdims=True) + 1e-12)
        o_ref[...] = (acc * inv).astype(o_ref.dtype)


def _weight_block_spec(tk, np_, n_k_steps):
    index_map = lambda i, kk: (kk, 0)
    if n_k_steps >= 3:
        try:
            # deeper buffering of the dominant HBM weight stream
            return pl.BlockSpec((tk, np_), index_map,
                                pipeline_mode=pl.Buffered(3))
        except Exception:  # older jax without pipeline_mode / Buffered
            pass
    return pl.BlockSpec((tk, np_), index_map)


def project_and_normalize(x, prep):
    """x: (M, K) against the prepared weight (Kp, Np) -> L2-normalised,
    LANE-PADDED (Mp, Np) float32.  The caller slices rows [:M] and, only where
    the unpadded width is needed, columns [:N]."""
    m, k = x.shape
    assert k == prep["k"], (k, prep["k"])
    tk, kp, np_ = prep["tk"], prep["kp"], prep["np"]

    tm = _choose_tm(m)
    # keep the total streamed footprint inside the (v7x-safe) VMEM budget
    while tm > _SUBLANE_BF16 and _block_vmem_bytes(tm, tk, np_) > _VMEM_BLOCK_BUDGET:
        tm = max(_SUBLANE_BF16, _round_up(tm // 2, _SUBLANE_BF16))
    mp = _round_up(m, tm)

    xp = jnp.pad(x.astype(jnp.bfloat16), ((0, mp - m), (0, kp - k)))

    n_k_steps = kp // tk
    out = pl.pallas_call(
        _proj_norm_kernel,
        out_shape=jax.ShapeDtypeStruct((mp, np_), jnp.float32),
        grid_spec=pltpu.PrefetchScalarGridSpec(
            num_scalar_prefetch=0,
            grid=(mp // tm, n_k_steps),
            in_specs=[
                pl.BlockSpec((tm, tk), lambda i, kk: (i, kk)),
                _weight_block_spec(tk, np_, n_k_steps),
            ],
            out_specs=pl.BlockSpec((tm, np_), lambda i, kk: (i, 0)),
            scratch_shapes=[pltpu.VMEM((tm, np_), jnp.float32)],
        ),
        compiler_params=pltpu.CompilerParams(
            dimension_semantics=("parallel", "arbitrary"),
            vmem_limit_bytes=_VMEM_LIMIT_BYTES,
        ),
    )(xp, prep["wp"])
    return out  # padded (Mp, Np); caller slices


# ----------------------------------------------------------------------------
# Kernel 2: ExtractKeyframes — similarity + iterative top-K frame selection
# ----------------------------------------------------------------------------
def _keyframe_pool_kernel(num_keyframes, t_ref, v_ref, pooled_ref, ids_ref):
    t = t_ref[...]                        # (B, Dp)   L2-normalised text
    v = v_ref[...]                        # (B, F, Dp) L2-normalised video
    b, f, _ = v.shape

    # cosine similarity on the MXU (features already normalised): (B, F)
    sims = jnp.einsum("bfd,bd->bf", v, t, preferred_element_type=jnp.float32)

    frame_iota = jax.lax.broadcasted_iota(jnp.int32, (b, f), 1)
    masked = sims
    for kf in range(num_keyframes):
        mx = jnp.max(masked, axis=-1, keepdims=True)                   # (B, 1)
        idx = jnp.min(
            jnp.where(masked == mx, frame_iota, jnp.int32(f)),
            axis=-1, keepdims=True,
        )                                                              # (B, 1)
        ids_ref[:, kf:kf + 1] = idx
        masked = jnp.where(frame_iota == idx, -jnp.inf, masked)

    # One (B,K,F) @ (B,F,Dp) MXU contraction gathers every keyframe; the
    # one-hot lives in registers (no K masked sub-lane scratch stores).
    ids = ids_ref[...]                                                 # (B, K)
    k_iota = jax.lax.broadcasted_iota(jnp.int32, (b, num_keyframes, f), 2)
    onehot = (ids[:, :, None] == k_iota).astype(jnp.float32)          # (B,K,F)
    pooled_ref[...] = jnp.einsum(
        "bkf,bfd->bkd", onehot, v, preferred_element_type=jnp.float32
    ).astype(pooled_ref.dtype)


def extract_keyframes(text_features, video_features, num_keyframes):
    """text (B, Dp), video (B, F, Dp) [lane-padded, L2-normalised]
    -> pooled (B, K, Dp) f32, ids (B, K, 1, 1) int32."""
    b, f, dp = video_features.shape
    assert text_features.shape == (b, dp)
    assert num_keyframes <= f, "num_keyframes must not exceed num_frames"

    # TODO(synk): for large B add a "parallel" grid over the batch (or fuse the
    # pooling into the video-projection epilogue); a single whole-array VMEM
    # block is fine at demo sizes.
    kernel = functools.partial(_keyframe_pool_kernel, num_keyframes)
    pooled, ids = pl.pallas_call(
        kernel,
        out_shape=(
            jax.ShapeDtypeStruct((b, num_keyframes, dp), jnp.float32),
            jax.ShapeDtypeStruct((b, num_keyframes), jnp.int32),
        ),
        in_specs=[
            pl.BlockSpec(memory_space=pltpu.MemorySpace.VMEM),
            pl.BlockSpec(memory_space=pltpu.MemorySpace.VMEM),
        ],
        out_specs=(
            pl.BlockSpec(memory_space=pltpu.MemorySpace.VMEM),
            pl.BlockSpec(memory_space=pltpu.MemorySpace.VMEM),
        ),
    )(text_features, video_features)
    return pooled, ids.reshape(b, num_keyframes, 1, 1)


# ----------------------------------------------------------------------------
# Python wrapper mirroring CLIPExtract.forward
# ----------------------------------------------------------------------------
def clip_extract_forward(data, params, config, return_all_frames=False):
    batch_size = data["video"].shape[0]
    text_data = data["text"]
    video_data = data["video"]
    frame_idx_first = data["frame_idx"]
    video_path = data["video_path"]
    conversations_id = data["conversations_id"]

    # Accept raw weights for convenience, but the hoisted prep is preferred.
    if not isinstance(params.get("w_img"), dict):
        params = prepare_clip_params(params, config, batch_size)
    prep_text, prep_img = params["w_text"], params["w_img"]
    assert prep_text["np"] == prep_img["np"]

    r = config["input_res"]
    nf = config["num_frames"]
    d = prep_img["n"]
    dp = prep_img["np"]

    video_data = video_data.reshape(-1, 3, r, r)               # (B*F,3,R,R) NCHW
    video_flat = video_data.reshape(video_data.shape[0], -1)   # (B*F, 3*R*R)

    # encode + L2-normalise (fused Pallas matmul kernels, lane-padded outputs)
    text_pad = project_and_normalize(text_data, prep_text)     # (Mp_t, Dp)
    video_pad = project_and_normalize(video_flat, prep_img)    # (Mp_v, Dp)

    # Keep the padded lane width end-to-end: the keyframe kernel consumes the
    # padded features directly; unpadded widths are sliced only on return.
    text_feat_pad = text_pad[:batch_size]                               # (B, Dp)
    video_feat_pad = video_pad[:batch_size * nf].reshape(batch_size, nf, dp)

    pooled_pad, frames_ids = extract_keyframes(
        text_feat_pad, video_feat_pad, config["num_keyframes"])

    text_features = text_feat_pad[:, :d]
    video_features = video_feat_pad[:, :, :d]
    video_features_pooled = pooled_pad[:, :, :d]

    # One batched device->host transfer instead of K blocking int() syncs.
    frames_ids_host = jax.device_get(frames_ids)
    frame_idx_host = jax.device_get(frame_idx_first)
    frames_ids_list = []
    frames_ids_direct_list = []
    for i in range(frames_ids_host.shape[1]):
        tem = int(frames_ids_host[0, i, 0, 0])
        frames_ids_direct_list.append(tem)
        frames_ids_list.append(int(frame_idx_host[tem]))

    if return_all_frames:
        return (text_features, video_features, video_features_pooled,
                frames_ids_list, video_path, conversations_id)
    return (text_features, video_features_pooled, frames_ids_list,
            video_path, conversations_id)


# ----------------------------------------------------------------------------
# Demo
# ----------------------------------------------------------------------------
if __name__ == "__main__":
    config = dict(
        input_res=16,      # small stand-in for 224
        num_frames=8,
        embed_dim=32,      # small stand-in for 512
        text_dim=64,
        num_keyframes=4,
    )
    B = 2

    key = jax.random.PRNGKey(0)
    k_vid, k_txt, k_wt, k_wi = jax.random.split(key, 4)

    video = jax.random.normal(
        k_vid,
        (B, config["num_frames"], 3, config["input_res"], config["input_res"]),
        jnp.float32,
    )
    text = jax.random.normal(k_txt, (B, config["text_dim"]), jnp.float32)

    raw_params = {
        "w_text": 0.02 * jax.random.normal(
            k_wt, (config["text_dim"], config["embed_dim"]), jnp.float32),
        "w_img": 0.02 * jax.random.normal(
            k_wi, (3 * config["input_res"] ** 2, config["embed_dim"]),
            jnp.float32),
    }
    # Hoisted once (per review): bf16 cast + tile padding of the weights.
    params = prepare_clip_params(raw_params, config, batch_size=B)

    data = {
        "video": video,
        "text": text,
        "frame_idx": jnp.arange(config["num_frames"], dtype=jnp.int32),
        "video_path": ["video_0.mp4", "video_1.mp4"],
        "conversations_id": [0, 1],
    }

    (text_features, video_features, video_features_pooled,
     frames_ids_list, video_path, conversations_id) = clip_extract_forward(
        data, params, config, return_all_frames=True)

    jax.block_until_ready(
        (text_features, video_features, video_features_pooled))

    # shape / range checks
    assert text_features.shape == (B, config["embed_dim"])
    assert video_features.shape == (B, config["num_frames"],
                                    config["embed_dim"])
    assert video_features_pooled.shape == (B, config["num_keyframes"],
                                           config["embed_dim"])
    assert len(frames_ids_list) == config["num_keyframes"]
    assert all(0 <= i < config["num_frames"] for i in frames_ids_list)

    # numerical check of the bf16-MXU path against an f32 XLA reference
    def _l2norm(a):
        return a / jnp.linalg.norm(a, axis=-1, keepdims=True)

    tf_ref = _l2norm(text @ raw_params["w_text"])
    vf_ref = _l2norm(
        video.reshape(B * config["num_frames"], -1) @ raw_params["w_img"]
    ).reshape(B, config["num_frames"], config["embed_dim"])
    assert jnp.allclose(text_features, tf_ref, atol=5e-2), "text feature mismatch"
    assert jnp.allclose(video_features, vf_ref, atol=5e-2), "video feature mismatch"

    # pooled keyframes must equal the selected frames (frame_idx is arange here,
    # so frames_ids_list holds the raw frame ids for batch 0)
    for i, fid in enumerate(frames_ids_list):
        assert jnp.allclose(video_features_pooled[0, i],
                            video_features[0, fid], atol=1e-2)

    print("KERNEL_OK")
</pallas_src>

<mosaic_0001>
module attributes {stable_mosaic.version = 11 : i64} {
  func.func @_proj_norm_kernel(%arg0: i32, %arg1: i32, %arg2: memref<16x128xbf16, #tpu.memory_space<vmem>>, %arg3: memref<128x128xbf16, #tpu.memory_space<vmem>>, %arg4: memref<16x128xf32, #tpu.memory_space<vmem>>, %arg5: memref<16x128xf32, #tpu.memory_space<vmem>>) attributes {dimension_semantics = [#tpu.dimension_semantics<parallel>, #tpu.dimension_semantics<arbitrary>], iteration_bounds = array<i64: 1, 1>, scalar_prefetch = 0 : i64, scratch_operands = 1 : i64, tpu.core_type = #tpu.core_type<tc>, window_params = [{transform_indices = @transform_0, window_bounds = array<i64: 16, 128>}, {transform_indices = @transform_1, window_bounds = array<i64: 128, 128>}, {transform_indices = @transform_2, window_bounds = array<i64: 16, 128>}]} {
    %c0_i32 = arith.constant 0 : i32
    %0 = arith.cmpi eq, %arg1, %c0_i32 : i32
    %1 = arith.extui %0 : i1 to i32
    %c0_i32_0 = arith.constant 0 : i32
    %2 = arith.cmpi ne, %1, %c0_i32_0 : i32
    scf.if %2 {
      %cst_10 = arith.constant 0.000000e+00 : f32
      %12 = vector.broadcast %cst_10 : f32 to vector<16x128xf32>
      %c0_11 = arith.constant 0 : index
      %c0_12 = arith.constant 0 : index
      %13 = vector.load %arg5[%c0_11, %c0_12] : memref<16x128xf32, #tpu.memory_space<vmem>>, vector<16x128xf32>
      tpu.vector_store %arg5[%c0_11, %c0_12], %12 {strides = array<i32>} : memref<16x128xf32, #tpu.memory_space<vmem>>, vector<16x128xf32>,
    } else {
    }
    %c0 = arith.constant 0 : index
    %c0_1 = arith.constant 0 : index
    %3 = vector.load %arg5[%c0, %c0_1] : memref<16x128xf32, #tpu.memory_space<vmem>>, vector<16x128xf32>
    %c0_2 = arith.constant 0 : index
    %c0_3 = arith.constant 0 : index
    %4 = vector.load %arg2[%c0_2, %c0_3] : memref<16x128xbf16, #tpu.memory_space<vmem>>, vector<16x128xbf16>
    %c0_4 = arith.constant 0 : index
    %c0_5 = arith.constant 0 : index
    %5 = vector.load %arg3[%c0_4, %c0_5] : memref<128x128xbf16, #tpu.memory_space<vmem>>, vector<128x128xbf16>
    %cst = arith.constant dense<0.000000e+00> : vector<16x128xf32>
    %6 = tpu.matmul %4, %5, %cst {dimension_numbers = #tpu.dot_dimension_numbers<[1], [0], [0], [1], [0, 0, 1, 1], [], []>} : vector<16x128xbf16>, vector<128x128xbf16>, vector<16x128xf32> -> vector<16x128xf32>
    %7 = arith.addf %3, %6 : vector<16x128xf32>
    %c0_6 = arith.constant 0 : index
    %c0_7 = arith.constant 0 : index
    %8 = vector.load %arg5[%c0_6, %c0_7] : memref<16x128xf32, #tpu.memory_space<vmem>>, vector<16x128xf32>
    tpu.vector_store %arg5[%c0_6, %c0_7], %7 {strides = array<i32>} : memref<16x128xf32, #tpu.memory_space<vmem>>, vector<16x128xf32>,
    %c0_i32_8 = arith.constant 0 : i32
    %9 = arith.cmpi eq, %arg1, %c0_i32_8 : i32
    %10 = arith.extui %9 : i1 to i32
    %c0_i32_9 = arith.constant 0 : i32
    %11 = arith.cmpi ne, %10, %c0_i32_9 : i32
    scf.if %11 {
      %c0_10 = arith.constant 0 : index
      %c0_11 = arith.constant 0 : index
      %12 = vector.load %arg5[%c0_10, %c0_11] : memref<16x128xf32, #tpu.memory_space<vmem>>, vector<16x128xf32>
      %13 = arith.mulf %12, %12 : vector<16x128xf32>
      %cst_12 = arith.constant dense<0.000000e+00> : vector<16xf32>
      %14 = vector.multi_reduction <add>, %13, %cst_12 [1] : vector<16x128xf32> to vector<16xf32>
      %15 = vector.shape_cast %14 : vector<16xf32> to vector<16x1xf32>
      %cst_13 = arith.constant 9.99999996E-13 : f32
      %16 = vector.broadcast %cst_13 : f32 to vector<16x1xf32>
      %17 = arith.addf %15, %16 : vector<16x1xf32>
      %18 = math.rsqrt %17 : vector<16x1xf32>
      %19 = vector.broadcast %18 : vector<16x1xf32> to vector<16x128xf32>
      %20 = arith.mulf %12, %19 : vector<16x128xf32>
      %c0_14 = arith.constant 0 : index
      %c0_15 = arith.constant 0 : index
      %21 = vector.load %arg4[%c0_14, %c0_15] : memref<16x128xf32, #tpu.memory_space<vmem>>, vector<16x128xf32>
      tpu.vector_store %arg4[%c0_14, %c0_15], %20 {strides = array<i32>} : memref<16x128xf32, #tpu.memory_space<vmem>>, vector<16x128xf32>,
    } else {
    }
    return
  }
  func.func @transform_0(%arg0: i32, %arg1: i32) -> (i32, i32) {
    %c0_i32 = arith.constant 0 : i32
    return %arg0, %arg1 : i32, i32
  }
  func.func @transform_1(%arg0: i32, %arg1: i32) -> (i32, i32) {
    %c0_i32 = arith.constant 0 : i32
    %c0_i32_0 = arith.constant 0 : i32
    return %arg1, %c0_i32 : i32, i32
  }
  func.func @transform_2(%arg0: i32, %arg1: i32) -> (i32, i32) {
    %c0_i32 = arith.constant 0 : i32
    %c0_i32_0 = arith.constant 0 : i32
    return %arg0, %c0_i32 : i32, i32
  }
}

</mosaic_0001>

<bundles_post_ra>
// kernel: tpu_custom_call.1
= control target key start
LH: loop header
LB: loop body
LE: loop exit
PB: predicated region body
PF: predicated region fallthrough
CT: control target
= control target key end

     0   :  { %7 = vsyncpa [#allocation4], 0  ;;  %s395_s0 = inlined_call_operand.hbm [shape: bf16[16,128], index: 0, kind: input, shape index: {}]   ;;  %s396_s1 = inlined_call_operand.hbm [shape: bf16[128,128], index: 1, kind: input, shape index: {}]   ;;  %s397_s2 = inlined_call_operand.hbm [shape: f32[16,128], index: 2, kind: output, shape index: {}]  }
   0x1   :  { %8 = vsyncpa [#allocation7], 0 }
   0x2   :  { %9 = vsyncpa [#allocation5], 0  ;;  %s335_s9 = smov [#allocation3]   ;;  %s263_s13 = scalar_lea.hbm %s395_s0, 128 }
   0x3   :  { %s15_s10 = sshll.u32 %s335_s9, 4  ;;  %p264_p0 = scmp.ne.s32.totalorder %s395_s0, %s263_s13  ;;  %s16_s10 = int_to_ptr.vmem [resolvable:$true] %s15_s10 }
   0x4   :  { %p267_p1 = scmp.lt.u32.totalorder %s263_s13, %s395_s0 }
   0x6   :  { %p269_p2 = pnand %p267_p1, %p264_p0 }
   0x8   :  { %272 = shalt.err (!%p269_p2)
}
   0x9   :  { %s273_s18 = scalar_lea.vmem %s16_s10, 128  ;;  %p278_p4 = scmp.lt.s32.totalorder %s16_s10, %s16_s10 }
   0xa   :  { %p274_p3 = scmp.ne.s32.totalorder %s16_s10, %s273_s18  ;;  %p279_p5 = scmp.lt.s32.totalorder %s273_s18, %s273_s18 }
   0xc   :  { %p280_p6 = por %p279_p5, %p278_p4 }
   0xe   :  { %p281_p7 = pnand %p280_p6, %p274_p3 }
  0x10   :  { %284 = shalt.err (!%p281_p7)
}
  0x11   :  { %s336_s19 = smov 64   ;;  %s337_s20 = smov 4  }
  0x12   :  { %21 = dma.hbm_to_vmem [thread:$0]  %s395_s0, 128, %s16_s10, [#allocation4], %s336_s19, %s336_s19, %s337_s20  }
  0x13   :  { %s338_s23 = smov [#allocation6]   ;;  %s285_s27 = scalar_lea.hbm %s396_s1, 1024 }
  0x14   :  { %s27_s24 = sshll.u32 %s338_s23, 4  ;;  %p286_p8 = scmp.ne.s32.totalorder %s396_s1, %s285_s27  ;;  %s28_s24 = int_to_ptr.vmem [resolvable:$true] %s27_s24 }
  0x15   :  { %p289_p9 = scmp.lt.u32.totalorder %s285_s27, %s396_s1 }
  0x17   :  { %p291_p10 = pnand %p289_p9, %p286_p8 }
  0x19   :  { %294 = shalt.err (!%p291_p10)
}
  0x1a   :  { %s295_s4 = scalar_lea.vmem %s28_s24, 1024  ;;  %p300_p12 = scmp.lt.s32.totalorder %s28_s24, %s28_s24 }
  0x1b   :  { %p296_p11 = scmp.ne.s32.totalorder %s28_s24, %s295_s4  ;;  %p301_p13 = scmp.lt.s32.totalorder %s295_s4, %s295_s4 }
  0x1d   :  { %p302_p0 = por %p301_p13, %p300_p12 }
  0x1f   :  { %p303_p1 = pnand %p302_p0, %p296_p11 }
  0x21   :  { %306 = shalt.err (!%p303_p1)
}
  0x22   :  { %33 = dma.hbm_to_vmem [thread:$0]  %s396_s1, 1024, %s28_s24, [#allocation7], %s336_s19, %s336_s19, %s337_s20  }
  0x23   :  { %329 = dma.done.wait [#allocation4], 128  }
  0x24   :  { %330 = vsyncadd [#allocation4], 4294967168 }
  0x25   :  { %331 = dma.done.wait [#allocation7], 1024  }
  0x26   :  { %332 = vsyncadd [#allocation7], 4294966272  ;;  %v339_v0 = vmov 0.0   ;;  %vm340_vm0 = vmmov 0   ;;  %v250_v1 = vld [vmem:[#allocation6] sm:$0xff]   ;;  %v251_v2 = vld [vmem:[#allocation6 + $0x8] sm:$0xff]  }
  0x27   :  { %221 = vmatprep.subr.bf16.mxu0 %v339_v0  ;;  %237 = vmatprep.mubr.msk.bf16.mxu0 %vm340_vm0, %v339_v0  ;;  %v252_v3 = vld [vmem:[#allocation6 + $0x10] sm:$0xff]   ;;  %v253_v4 = vld [vmem:[#allocation6 + $0x18] sm:$0xff]   ;;  %v254_v5 = vld [vmem:[#allocation6 + $0x20] sm:$0xff]   ;;  %s341_s1 = smov [#allocation8]  }
  0x28   :  { %222 = vmatpush3.bf16.msra.mxu0 %v250_v1  ;;  %v255_v6 = vld [vmem:[#allocation6 + $0x28] sm:$0xff]   ;;  %v256_v7 = vld [vmem:[#allocation6 + $0x30] sm:$0xff]   ;;  %v257_v8 = vld [vmem:[#allocation6 + $0x38] sm:$0xff]   ;;  %s190_s6 = sshll.u32 %s341_s1, 4  ;;  %s191_s6 = int_to_ptr.vmem [resolvable:$true] %s190_s6 }
  0x29   :  { %223 = vmatprep.subr.bf16.mxu0 %v339_v0  ;;  %v258_v9 = vld [vmem:[#allocation3] sm:$0xff]   ;;  %s307_s7 = scalar_lea.vmem %s191_s6, 256  ;;  %p312_p3 = scmp.lt.s32.totalorder %s191_s6, %s191_s6 }
  0x2a   :  { %p308_p2 = scmp.ne.s32.totalorder %s191_s6, %s307_s7  ;;  %p313_p4 = scmp.lt.s32.totalorder %s307_s7, %s307_s7 }
  0x2c   :  { %224 = vmatpush3.bf16.msra.mxu0 %v251_v2  ;;  %p314_p5 = por %p313_p4, %p312_p3 }
  0x2d   :  { %225 = vmatprep.subr.bf16.mxu0 %v339_v0 }
  0x2e   :  { %p315_p6 = pnand %p314_p5, %p308_p2 }
  0x30   :  { %226 = vmatpush3.bf16.msra.mxu0 %v252_v3 }
  0x31   :  { %227 = vmatprep.subr.bf16.mxu0 %v339_v0 }
  0x34   :  { %228 = vmatpush3.bf16.msra.mxu0 %v253_v4 }
  0x35   :  { %229 = vmatprep.subr.bf16.mxu0 %v339_v0 }
  0x38   :  { %230 = vmatpush3.bf16.msra.mxu0 %v254_v5 }
  0x39   :  { %231 = vmatprep.subr.bf16.mxu0 %v339_v0 }
  0x3c   :  { %232 = vmatpush3.bf16.msra.mxu0 %v255_v6 }
  0x3d   :  { %233 = vmatprep.subr.bf16.mxu0 %v339_v0 }
  0x40   :  { %234 = vmatpush3.bf16.msra.mxu0 %v256_v7 }
  0x41   :  { %235 = vmatprep.subr.bf16.mxu0 %v339_v0 }
  0x44   :  { %236 = vmatpush3.bf16.msra.mxu0 %v257_v8 }
  0x47   :  { %238 = vmatmul.mubr.bf16.vlgmr.msra.gmra.mrb[0].mxu0 %v258_v9 }
 0x11a   :  { %v155_v10 = vpop.f32.mrb[0].mxu0 }
 0x11b   :  { %v239_v11 = vpop.f32.mrb[1].mxu0  ;;  %v171_v12 = vmul.f32 %v155_v10, %v155_v10 }
 0x11c   :  { %v158_v13 = vpop.f32.mrb[2].mxu0 }
 0x11d   :  { %173 = vadd.xlane.f32.xlu0 %v171_v12  ;;  %v240_v14 = vpop.f32.mrb[3].mxu0  ;;  %v172_v15 = vmul.f32 %v158_v13, %v158_v13 }
 0x121   :  { %175 = vadd.xlane.f32.xlu0 %v172_v15 }
 0x1aa   :  { %v174_v16 = vpop.xlane.xlu0 %173 }
 0x1ab   :  { %v177_v17 = vadd.f32 1e-12, %v174_v16 }
 0x1ad   :  { %259 = vrsqrt.f32 %v177_v17 }
 0x1ae   :  { %v176_v18 = vpop.xlane.xlu0 %175 }
 0x1af   :  { %v178_v19 = vadd.f32 1e-12, %v176_v18 }
 0x1b1   :  { %261 = vrsqrt.f32 %v178_v19 }
 0x1b7   :  { %v260_v20 = vpop.eup %259 }
 0x1b8   :  { %v181_v21 = vmul.f32 %v260_v20, %v155_v10 }
 0x1ba   :  { %183 = vst [vmem:[#allocation8] sm:$0xff] %v181_v21 }
 0x1bb   :  { %v262_v22 = vpop.eup %261 }
 0x1bc   :  { %v182_v23 = vmul.f32 %v262_v22, %v158_v13 }
 0x1be   :  { %184 = vst [vmem:[#allocation8 + $0x8] sm:$0xff] %v182_v23 }
 0x1bf   :  { %318 = shalt.err (!%p315_p6)
}
 0x1c0   :  { %s319_s10 = scalar_lea.hbm %s397_s2, 256 }
 0x1c1   :  { %p320_p7 = scmp.ne.s32.totalorder %s397_s2, %s319_s10  ;;  %p323_p8 = scmp.lt.u32.totalorder %s319_s10, %s397_s2 }
 0x1c3   :  { %p325_p9 = pnand %p323_p8, %p320_p7 }
 0x1c5   :  { %328 = shalt.err (!%p325_p9)
}
 0x1c6   :  { %s342_s15 = smov 128   ;;  %s343_s16 = smov 8  }
 0x1c7   :  { %196 = dma.vmem_to_hbm [thread:$0]  %s191_s6, 256, %s397_s2, [#allocation5], %s342_s15, %s342_s15, %s343_s16  }
 0x1c8   :  { %333 = dma.done.wait [#allocation5], 256  }
 0x1c9   :  { %334 = vsyncadd [#allocation5], 4294967040 }
 0x1ca   :  { %200 = vsyncpa [#allocation4], 1 }
 0x1cb   :  { %201 = vsyncpa [#allocation7], 1 }
 0x1cc   :  { %202 = vsyncpa [#allocation5], 1 }

</bundles_post_ra>
